<compile_context>
chip_gen: v7x
topology: tpu7x:2x2x1
jax: 0.10.0
libtpu: 0.0.40
codegen_flags: <defaults>
</compile_context>

<pallas_src>
import functools

import jax
import jax.numpy as jnp
from jax.experimental import pallas as pl
from jax.experimental.pallas import tpu as pltpu


def atten_rnn_kernel(x_ref, wih_ref, whh_ref, rnn_b_ref, w_ref, b_ref, out_ref,
                     *, exact_softmax):
    seq_len, bt, emb = x_ref.shape
    n_hidden = whh_ref.shape[0]
    md = whh_ref.dtype                       # matmul operand dtype (f32 / bf16)

    # ---- hoisted weight / bias loads (once per grid step) -------------------
    w_ih = wih_ref[...]                      # (emb, hidden)     operand dtype
    w_hh = whh_ref[...]                      # (hidden, hidden)  operand dtype
    rnn_b = rnn_b_ref[...]                   # (1, hidden)       f32 = b_ih+b_hh

    # ---- fused input projection for ALL timesteps (off the serial chain),
    #      kept time-major so the recurrence slices the leading axis. --------
    x2 = x_ref[...].reshape(seq_len * bt, emb)
    xw = jnp.dot(x2, w_ih, preferred_element_type=jnp.float32) + rnn_b
    xw = xw.reshape(seq_len, bt, n_hidden)   # (seq, bt, hidden), f32

    # ---- RNN recurrence: h_t = tanh(xw[t] + h_{t-1} @ W_hh).  Only the dot
    #      is serially dependent; hidden states stay as register values.
    # TODO(synk): at large tb*n_hidden, spill hs into a (seq, tb, hidden) VMEM
    # scratch instead of a Python list to bound vreg pressure.
    h = jnp.zeros((bt, n_hidden), jnp.float32)
    hs = []
    for t in range(seq_len):                 # static, fully unrolled
        pre = xw[t] + jnp.dot(h.astype(md), w_hh,
                              preferred_element_type=jnp.float32)
        h = jnp.tanh(pre)                    # activation math in f32
        hs.append(h)
    h_last = hs[-1]                          # (bt, hidden)

    # ---- attention scores consolidated into ONE lane-major (bt, seq-1)
    #      tensor -> single max / exp / sum / reciprocal. --------------------
    lane_idx = jax.lax.broadcasted_iota(jnp.int32, (bt, seq_len - 1), 1)
    scores = jnp.zeros((bt, seq_len - 1), jnp.float32)
    for t in range(seq_len - 1):
        s_t = jnp.sum(hs[t] * h_last, axis=-1, keepdims=True)     # (bt, 1)
        scores = scores + jnp.where(lane_idx == t, s_t, 0.0)

    m = jnp.max(scores, axis=-1, keepdims=True)
    e = jnp.exp(scores - m)                                        # one exp
    denom = jnp.sum(e, axis=-1, keepdims=True)
    if exact_softmax:
        inv = 1.0 / denom                    # strict parity path
    else:
        inv = pl.reciprocal(denom, approx=True)                    # EUP slot

    # ---- context: accumulate un-normalised, normalise once at the end. -----
    ctx = e[:, 0:1] * hs[0]
    for t in range(1, seq_len - 1):
        ctx = ctx + e[:, t:t + 1] * hs[t]
    ctx = ctx * inv                          # (bt, hidden), f32

    # ---- output head: two accumulating dots instead of a lane-axis concat. -
    w_top = w_ref[:n_hidden, :]              # rows multiplying ctx
    w_bot = w_ref[n_hidden:, :]              # rows multiplying h_last
    out = jnp.dot(ctx.astype(md), w_top, preferred_element_type=jnp.float32)
    out = out + jnp.dot(h_last.astype(md), w_bot,
                        preferred_element_type=jnp.float32)
    out_ref[...] = out + b_ref[...]


def atten_rnn_forward(X, params, *, batch_tile=None, matmul_dtype=jnp.float32,
                      exact_softmax=False):
    emb = params["emb"]            # (n_class, emb_size)
    w_ih = params["w_ih"]          # (emb_size, n_hidden)  (pre-transposed)
    b_ih = params["b_ih"]          # (n_hidden,)
    w_hh = params["w_hh"]          # (n_hidden, n_hidden)  (pre-transposed)
    b_hh = params["b_hh"]          # (n_hidden,)
    W = params["W"]                # (2*n_hidden, n_class) (pre-transposed)
    b = params["b"]                # (n_class,)

    batch, seq_len = X.shape
    assert seq_len >= 2, "Atten_RNN needs seq_len >= 2 (attention over outputs[:-1])"
    emb_size = emb.shape[1]
    n_hidden = w_hh.shape[0]
    n_class = W.shape[1]

    # Embedding lookup (plain-JAX glue), gathered directly TIME-MAJOR and cast
    # to the matmul operand dtype so the pallas input DMA already streams bf16
    # on the bf16 path.
    x_emb = emb[X.T].astype(matmul_dtype)              # (seq, batch, emb)

    # Lane-dense output: pad n_class to a multiple of 128 (zero-padded W / b),
    # slice back after the call.
    n_class_p = ((n_class + 127) // 128) * 128
    W_p = jnp.zeros((2 * n_hidden, n_class_p), matmul_dtype)
    W_p = W_p.at[:, :n_class].set(W.astype(matmul_dtype))
    b_p = jnp.zeros((1, n_class_p), jnp.float32).at[:, :n_class].set(
        b.astype(jnp.float32))

    rnn_bias = (b_ih + b_hh).reshape(1, n_hidden).astype(jnp.float32)

    # ---- batch tile: grid >= 2 when the batch allows an 8-aligned split
    #      (keeps both v7x TensorCores busy); cap tile size to bound VMEM. ----
    if batch_tile is None:
        tb = batch
        if batch % 16 == 0:
            tb = batch // 2
            while tb > 256 and tb % 16 == 0:
                tb //= 2
    else:
        tb = batch_tile
    assert batch % tb == 0 and (tb == batch or tb % 8 == 0), (batch, tb)

    # ---- VMEM budget: double-buffered inputs/outputs + f32 live values;
    #      never below the 32 MiB scoped default, capped at v7x's 64 MiB. ----
    isz = jnp.dtype(matmul_dtype).itemsize
    x_tile_b = seq_len * tb * emb_size * isz
    w_b = (emb_size * n_hidden + n_hidden * n_hidden
           + 2 * n_hidden * n_class_p) * isz
    io_b = (n_hidden + n_class_p) * 4 + tb * n_class_p * 4
    live_b = (seq_len + 2) * tb * n_hidden * 4
    need = 2 * (x_tile_b + w_b + io_b) + live_b
    vmem_limit = int(min(max(32 << 20, 2 * need), 64 << 20))

    kernel = functools.partial(atten_rnn_kernel, exact_softmax=exact_softmax)

    out = pl.pallas_call(
        kernel,
        out_shape=jax.ShapeDtypeStruct((batch, n_class_p), jnp.float32),
        grid=(batch // tb,),
        in_specs=[
            pl.BlockSpec((seq_len, tb, emb_size), lambda i: (0, i, 0)),
            pl.BlockSpec((emb_size, n_hidden), lambda i: (0, 0)),
            pl.BlockSpec((n_hidden, n_hidden), lambda i: (0, 0)),
            pl.BlockSpec((1, n_hidden), lambda i: (0, 0)),
            pl.BlockSpec((2 * n_hidden, n_class_p), lambda i: (0, 0)),
            pl.BlockSpec((1, n_class_p), lambda i: (0, 0)),
        ],
        out_specs=pl.BlockSpec((tb, n_class_p), lambda i: (i, 0)),
        compiler_params=pltpu.CompilerParams(
            dimension_semantics=("parallel",),
            vmem_limit_bytes=vmem_limit),
    )(x_emb, w_ih.astype(matmul_dtype), w_hh.astype(matmul_dtype), rnn_bias,
      W_p, b_p)

    return out[:, :n_class]


def reference_forward(X, params):
    """Pure-JAX re-implementation of the PyTorch forward (for verification)."""
    emb, w_ih, b_ih, w_hh, b_hh, W, b = (params[k] for k in
                                         ("emb", "w_ih", "b_ih", "w_hh",
                                          "b_hh", "W", "b"))
    x = jnp.transpose(emb[X], (1, 0, 2)).astype(jnp.float32)  # (seq, batch, emb)
    seq_len, batch, _ = x.shape
    n_hidden = w_hh.shape[0]
    h = jnp.zeros((batch, n_hidden), jnp.float32)
    outs = []
    for t in range(seq_len):
        h = jnp.tanh(x[t] @ w_ih + b_ih + h @ w_hh + b_hh)
        outs.append(h)
    outs = jnp.stack(outs)                      # (seq, batch, hidden)
    h_last = outs[-1]
    scores = jnp.sum(outs[:-1] * h_last[None], axis=-1)       # (seq-1, batch)
    attn = jax.nn.softmax(scores, axis=0)
    ctx = jnp.sum(attn[:, :, None] * outs[:-1], axis=0)       # (batch, hidden)
    feat = jnp.concatenate([ctx, h_last], axis=1)
    return feat @ W + b


def init_params(key, n_class, emb_size, n_hidden):
    ks = jax.random.split(key, 5)
    k_rnn = 1.0 / jnp.sqrt(n_hidden)
    k_lin = 1.0 / jnp.sqrt(2 * n_hidden)
    return {
        "emb": jax.random.normal(ks[0], (n_class, emb_size), jnp.float32),
        "w_ih": jax.random.uniform(ks[1], (emb_size, n_hidden), jnp.float32,
                                   -k_rnn, k_rnn),
        "b_ih": jax.random.uniform(ks[2], (n_hidden,), jnp.float32,
                                   -k_rnn, k_rnn),
        "w_hh": jax.random.uniform(ks[3], (n_hidden, n_hidden), jnp.float32,
                                   -k_rnn, k_rnn),
        "b_hh": jnp.zeros((n_hidden,), jnp.float32),
        "W": jax.random.uniform(ks[4], (2 * n_hidden, n_class), jnp.float32,
                                -k_lin, k_lin),
        "b": jnp.ones((n_class,), jnp.float32),   # nn.Parameter(torch.ones([n_class]))
    }


if __name__ == "__main__":
    n_class, emb_size, n_hidden = 16, 32, 32
    batch, seq_len = 2, 8

    key = jax.random.PRNGKey(0)
    k_param, k_x = jax.random.split(key)
    params = init_params(k_param, n_class, emb_size, n_hidden)
    X = jax.random.randint(k_x, (batch, seq_len), 0, n_class, dtype=jnp.int32)

    ref = jax.block_until_ready(reference_forward(X, params))

    # Strict-parity f32 path (exact softmax division).
    out_exact = jax.block_until_ready(
        atten_rnn_forward(X, params, exact_softmax=True))
    assert out_exact.shape == (batch, n_class)
    assert jnp.allclose(out_exact, ref, atol=1e-3, rtol=1e-3), (out_exact, ref)

    # Default f32 path (approx-reciprocal softmax on the EUP).
    out = jax.block_until_ready(atten_rnn_forward(X, params))
    assert out.shape == (batch, n_class)
    assert jnp.allclose(out, ref, atol=3e-3, rtol=3e-3), (out, ref)

    # bf16 matmul operands streamed from HBM; f32 accumulation / activations.
    out_bf16 = jax.block_until_ready(
        atten_rnn_forward(X, params, matmul_dtype=jnp.bfloat16))
    assert out_bf16.shape == (batch, n_class)
    assert jnp.allclose(out_bf16, ref, atol=1e-1, rtol=1e-1), (out_bf16, ref)

    print("KERNEL_OK")
</pallas_src>

<mosaic_0001>
module attributes {stable_mosaic.version = 11 : i64} {
  func.func @atten_rnn_kernel(%arg0: i32, %arg1: memref<8x2x32xf32, #tpu.memory_space<vmem>>, %arg2: memref<32x32xf32, #tpu.memory_space<vmem>>, %arg3: memref<32x32xf32, #tpu.memory_space<vmem>>, %arg4: memref<1x32xf32, #tpu.memory_space<vmem>>, %arg5: memref<64x128xf32, #tpu.memory_space<vmem>>, %arg6: memref<1x128xf32, #tpu.memory_space<vmem>>, %arg7: memref<2x128xf32, #tpu.memory_space<vmem>>) attributes {dimension_semantics = [#tpu.dimension_semantics<parallel>], iteration_bounds = array<i64: 1>, scalar_prefetch = 0 : i64, scratch_operands = 0 : i64, tpu.core_type = #tpu.core_type<tc>, window_params = [{transform_indices = @transform_0, window_bounds = array<i64: 8, 2, 32>}, {pipeline_mode = #tpu.pipeline_mode<synchronous>, transform_indices = @transform_1, window_bounds = array<i64: 32, 32>}, {pipeline_mode = #tpu.pipeline_mode<synchronous>, transform_indices = @transform_2, window_bounds = array<i64: 32, 32>}, {pipeline_mode = #tpu.pipeline_mode<synchronous>, transform_indices = @transform_3, window_bounds = array<i64: 1, 32>}, {pipeline_mode = #tpu.pipeline_mode<synchronous>, transform_indices = @transform_4, window_bounds = array<i64: 64, 128>}, {pipeline_mode = #tpu.pipeline_mode<synchronous>, transform_indices = @transform_5, window_bounds = array<i64: 1, 128>}, {transform_indices = @transform_6, window_bounds = array<i64: 2, 128>}]} {
    %c0 = arith.constant 0 : index
    %c0_0 = arith.constant 0 : index
    %0 = vector.load %arg2[%c0, %c0_0] : memref<32x32xf32, #tpu.memory_space<vmem>>, vector<32x32xf32>
    %c0_1 = arith.constant 0 : index
    %c0_2 = arith.constant 0 : index
    %1 = vector.load %arg3[%c0_1, %c0_2] : memref<32x32xf32, #tpu.memory_space<vmem>>, vector<32x32xf32>
    %c0_3 = arith.constant 0 : index
    %c0_4 = arith.constant 0 : index
    %2 = vector.load %arg4[%c0_3, %c0_4] : memref<1x32xf32, #tpu.memory_space<vmem>>, vector<1x32xf32>
    %c0_5 = arith.constant 0 : index
    %c0_6 = arith.constant 0 : index
    %c0_7 = arith.constant 0 : index
    %3 = vector.load %arg1[%c0_5, %c0_6, %c0_7] : memref<8x2x32xf32, #tpu.memory_space<vmem>>, vector<8x2x32xf32>
    %4 = vector.shape_cast %3 : vector<8x2x32xf32> to vector<16x32xf32>
    %cst = arith.constant dense<0.000000e+00> : vector<16x32xf32>
    %5 = tpu.matmul %4, %0, %cst {dimension_numbers = #tpu.dot_dimension_numbers<[1], [0], [0], [1], [0, 0, 1, 1], [], []>} : vector<16x32xf32>, vector<32x32xf32>, vector<16x32xf32> -> vector<16x32xf32>
    %6 = vector.broadcast %2 : vector<1x32xf32> to vector<16x32xf32>
    %7 = arith.addf %5, %6 : vector<16x32xf32>
    %8 = vector.shape_cast %7 : vector<16x32xf32> to vector<8x2x32xf32>
    %cst_8 = arith.constant 0.000000e+00 : f32
    %9 = vector.broadcast %cst_8 : f32 to vector<2x32xf32>
    %10 = vector.extract_strided_slice %8 {offsets = [0, 0, 0], sizes = [1, 2, 32], strides = [1, 1, 1]} : vector<8x2x32xf32> to vector<1x2x32xf32>
    %11 = vector.shape_cast %10 : vector<1x2x32xf32> to vector<2x32xf32>
    %cst_9 = arith.constant dense<0.000000e+00> : vector<2x32xf32>
    %12 = tpu.matmul %9, %1, %cst_9 {dimension_numbers = #tpu.dot_dimension_numbers<[1], [0], [0], [1], [0, 0, 1, 1], [], []>} : vector<2x32xf32>, vector<32x32xf32>, vector<2x32xf32> -> vector<2x32xf32>
    %13 = arith.addf %11, %12 : vector<2x32xf32>
    %14 = math.tanh %13 : vector<2x32xf32>
    %15 = vector.extract_strided_slice %8 {offsets = [1, 0, 0], sizes = [1, 2, 32], strides = [1, 1, 1]} : vector<8x2x32xf32> to vector<1x2x32xf32>
    %16 = vector.shape_cast %15 : vector<1x2x32xf32> to vector<2x32xf32>
    %cst_10 = arith.constant dense<0.000000e+00> : vector<2x32xf32>
    %17 = tpu.matmul %14, %1, %cst_10 {dimension_numbers = #tpu.dot_dimension_numbers<[1], [0], [0], [1], [0, 0, 1, 1], [], []>} : vector<2x32xf32>, vector<32x32xf32>, vector<2x32xf32> -> vector<2x32xf32>
    %18 = arith.addf %16, %17 : vector<2x32xf32>
    %19 = math.tanh %18 : vector<2x32xf32>
    %20 = vector.extract_strided_slice %8 {offsets = [2, 0, 0], sizes = [1, 2, 32], strides = [1, 1, 1]} : vector<8x2x32xf32> to vector<1x2x32xf32>
    %21 = vector.shape_cast %20 : vector<1x2x32xf32> to vector<2x32xf32>
    %cst_11 = arith.constant dense<0.000000e+00> : vector<2x32xf32>
    %22 = tpu.matmul %19, %1, %cst_11 {dimension_numbers = #tpu.dot_dimension_numbers<[1], [0], [0], [1], [0, 0, 1, 1], [], []>} : vector<2x32xf32>, vector<32x32xf32>, vector<2x32xf32> -> vector<2x32xf32>
    %23 = arith.addf %21, %22 : vector<2x32xf32>
    %24 = math.tanh %23 : vector<2x32xf32>
    %25 = vector.extract_strided_slice %8 {offsets = [3, 0, 0], sizes = [1, 2, 32], strides = [1, 1, 1]} : vector<8x2x32xf32> to vector<1x2x32xf32>
    %26 = vector.shape_cast %25 : vector<1x2x32xf32> to vector<2x32xf32>
    %cst_12 = arith.constant dense<0.000000e+00> : vector<2x32xf32>
    %27 = tpu.matmul %24, %1, %cst_12 {dimension_numbers = #tpu.dot_dimension_numbers<[1], [0], [0], [1], [0, 0, 1, 1], [], []>} : vector<2x32xf32>, vector<32x32xf32>, vector<2x32xf32> -> vector<2x32xf32>
    %28 = arith.addf %26, %27 : vector<2x32xf32>
    %29 = math.tanh %28 : vector<2x32xf32>
    %30 = vector.extract_strided_slice %8 {offsets = [4, 0, 0], sizes = [1, 2, 32], strides = [1, 1, 1]} : vector<8x2x32xf32> to vector<1x2x32xf32>
    %31 = vector.shape_cast %30 : vector<1x2x32xf32> to vector<2x32xf32>
    %cst_13 = arith.constant dense<0.000000e+00> : vector<2x32xf32>
    %32 = tpu.matmul %29, %1, %cst_13 {dimension_numbers = #tpu.dot_dimension_numbers<[1], [0], [0], [1], [0, 0, 1, 1], [], []>} : vector<2x32xf32>, vector<32x32xf32>, vector<2x32xf32> -> vector<2x32xf32>
    %33 = arith.addf %31, %32 : vector<2x32xf32>
    %34 = math.tanh %33 : vector<2x32xf32>
    %35 = vector.extract_strided_slice %8 {offsets = [5, 0, 0], sizes = [1, 2, 32], strides = [1, 1, 1]} : vector<8x2x32xf32> to vector<1x2x32xf32>
    %36 = vector.shape_cast %35 : vector<1x2x32xf32> to vector<2x32xf32>
    %cst_14 = arith.constant dense<0.000000e+00> : vector<2x32xf32>
    %37 = tpu.matmul %34, %1, %cst_14 {dimension_numbers = #tpu.dot_dimension_numbers<[1], [0], [0], [1], [0, 0, 1, 1], [], []>} : vector<2x32xf32>, vector<32x32xf32>, vector<2x32xf32> -> vector<2x32xf32>
    %38 = arith.addf %36, %37 : vector<2x32xf32>
    %39 = math.tanh %38 : vector<2x32xf32>
    %40 = vector.extract_strided_slice %8 {offsets = [6, 0, 0], sizes = [1, 2, 32], strides = [1, 1, 1]} : vector<8x2x32xf32> to vector<1x2x32xf32>
    %41 = vector.shape_cast %40 : vector<1x2x32xf32> to vector<2x32xf32>
    %cst_15 = arith.constant dense<0.000000e+00> : vector<2x32xf32>
    %42 = tpu.matmul %39, %1, %cst_15 {dimension_numbers = #tpu.dot_dimension_numbers<[1], [0], [0], [1], [0, 0, 1, 1], [], []>} : vector<2x32xf32>, vector<32x32xf32>, vector<2x32xf32> -> vector<2x32xf32>
    %43 = arith.addf %41, %42 : vector<2x32xf32>
    %44 = math.tanh %43 : vector<2x32xf32>
    %45 = vector.extract_strided_slice %8 {offsets = [7, 0, 0], sizes = [1, 2, 32], strides = [1, 1, 1]} : vector<8x2x32xf32> to vector<1x2x32xf32>
    %46 = vector.shape_cast %45 : vector<1x2x32xf32> to vector<2x32xf32>
    %cst_16 = arith.constant dense<0.000000e+00> : vector<2x32xf32>
    %47 = tpu.matmul %44, %1, %cst_16 {dimension_numbers = #tpu.dot_dimension_numbers<[1], [0], [0], [1], [0, 0, 1, 1], [], []>} : vector<2x32xf32>, vector<32x32xf32>, vector<2x32xf32> -> vector<2x32xf32>
    %48 = arith.addf %46, %47 : vector<2x32xf32>
    %49 = math.tanh %48 : vector<2x32xf32>
    %50 = tpu.iota {dimensions = array<i32: 1>} : vector<2x7xi32>
    %cst_17 = arith.constant 0.000000e+00 : f32
    %51 = vector.broadcast %cst_17 : f32 to vector<2x7xf32>
    %52 = arith.mulf %14, %49 : vector<2x32xf32>
    %cst_18 = arith.constant dense<0.000000e+00> : vector<2xf32>
    %53 = vector.multi_reduction <add>, %52, %cst_18 [1] : vector<2x32xf32> to vector<2xf32>
    %54 = vector.shape_cast %53 : vector<2xf32> to vector<2x1xf32>
    %c0_i32 = arith.constant 0 : i32
    %55 = vector.broadcast %c0_i32 : i32 to vector<2x7xi32>
    %56 = arith.cmpi eq, %50, %55 : vector<2x7xi32>
    %cst_19 = arith.constant 0.000000e+00 : f32
    %57 = vector.shape_cast %54 : vector<2x1xf32> to vector<2x1xf32>
    %58 = vector.broadcast %57 : vector<2x1xf32> to vector<2x7xf32>
    %59 = vector.broadcast %cst_19 : f32 to vector<2x7xf32>
    %60 = arith.select %56, %58, %59 : vector<2x7xi1>, vector<2x7xf32>
    %61 = arith.addf %51, %60 : vector<2x7xf32>
    %62 = arith.mulf %19, %49 : vector<2x32xf32>
    %cst_20 = arith.constant dense<0.000000e+00> : vector<2xf32>
    %63 = vector.multi_reduction <add>, %62, %cst_20 [1] : vector<2x32xf32> to vector<2xf32>
    %64 = vector.shape_cast %63 : vector<2xf32> to vector<2x1xf32>
    %c1_i32 = arith.constant 1 : i32
    %65 = vector.broadcast %c1_i32 : i32 to vector<2x7xi32>
    %66 = arith.cmpi eq, %50, %65 : vector<2x7xi32>
    %cst_21 = arith.constant 0.000000e+00 : f32
    %67 = vector.shape_cast %64 : vector<2x1xf32> to vector<2x1xf32>
    %68 = vector.broadcast %67 : vector<2x1xf32> to vector<2x7xf32>
    %69 = vector.broadcast %cst_21 : f32 to vector<2x7xf32>
    %70 = arith.select %66, %68, %69 : vector<2x7xi1>, vector<2x7xf32>
    %71 = arith.addf %61, %70 : vector<2x7xf32>
    %72 = arith.mulf %24, %49 : vector<2x32xf32>
    %cst_22 = arith.constant dense<0.000000e+00> : vector<2xf32>
    %73 = vector.multi_reduction <add>, %72, %cst_22 [1] : vector<2x32xf32> to vector<2xf32>
    %74 = vector.shape_cast %73 : vector<2xf32> to vector<2x1xf32>
    %c2_i32 = arith.constant 2 : i32
    %75 = vector.broadcast %c2_i32 : i32 to vector<2x7xi32>
    %76 = arith.cmpi eq, %50, %75 : vector<2x7xi32>
    %cst_23 = arith.constant 0.000000e+00 : f32
    %77 = vector.shape_cast %74 : vector<2x1xf32> to vector<2x1xf32>
    %78 = vector.broadcast %77 : vector<2x1xf32> to vector<2x7xf32>
    %79 = vector.broadcast %cst_23 : f32 to vector<2x7xf32>
    %80 = arith.select %76, %78, %79 : vector<2x7xi1>, vector<2x7xf32>
    %81 = arith.addf %71, %80 : vector<2x7xf32>
    %82 = arith.mulf %29, %49 : vector<2x32xf32>
    %cst_24 = arith.constant dense<0.000000e+00> : vector<2xf32>
    %83 = vector.multi_reduction <add>, %82, %cst_24 [1] : vector<2x32xf32> to vector<2xf32>
    %84 = vector.shape_cast %83 : vector<2xf32> to vector<2x1xf32>
    %c3_i32 = arith.constant 3 : i32
    %85 = vector.broadcast %c3_i32 : i32 to vector<2x7xi32>
    %86 = arith.cmpi eq, %50, %85 : vector<2x7xi32>
    %cst_25 = arith.constant 0.000000e+00 : f32
    %87 = vector.shape_cast %84 : vector<2x1xf32> to vector<2x1xf32>
    %88 = vector.broadcast %87 : vector<2x1xf32> to vector<2x7xf32>
    %89 = vector.broadcast %cst_25 : f32 to vector<2x7xf32>
    %90 = arith.select %86, %88, %89 : vector<2x7xi1>, vector<2x7xf32>
    %91 = arith.addf %81, %90 : vector<2x7xf32>
    %92 = arith.mulf %34, %49 : vector<2x32xf32>
    %cst_26 = arith.constant dense<0.000000e+00> : vector<2xf32>
    %93 = vector.multi_reduction <add>, %92, %cst_26 [1] : vector<2x32xf32> to vector<2xf32>
    %94 = vector.shape_cast %93 : vector<2xf32> to vector<2x1xf32>
    %c4_i32 = arith.constant 4 : i32
    %95 = vector.broadcast %c4_i32 : i32 to vector<2x7xi32>
    %96 = arith.cmpi eq, %50, %95 : vector<2x7xi32>
    %cst_27 = arith.constant 0.000000e+00 : f32
    %97 = vector.shape_cast %94 : vector<2x1xf32> to vector<2x1xf32>
    %98 = vector.broadcast %97 : vector<2x1xf32> to vector<2x7xf32>
    %99 = vector.broadcast %cst_27 : f32 to vector<2x7xf32>
    %100 = arith.select %96, %98, %99 : vector<2x7xi1>, vector<2x7xf32>
    %101 = arith.addf %91, %100 : vector<2x7xf32>
    %102 = arith.mulf %39, %49 : vector<2x32xf32>
    %cst_28 = arith.constant dense<0.000000e+00> : vector<2xf32>
    %103 = vector.multi_reduction <add>, %102, %cst_28 [1] : vector<2x32xf32> to vector<2xf32>
    %104 = vector.shape_cast %103 : vector<2xf32> to vector<2x1xf32>
    %c5_i32 = arith.constant 5 : i32
    %105 = vector.broadcast %c5_i32 : i32 to vector<2x7xi32>
    %106 = arith.cmpi eq, %50, %105 : vector<2x7xi32>
    %cst_29 = arith.constant 0.000000e+00 : f32
    %107 = vector.shape_cast %104 : vector<2x1xf32> to vector<2x1xf32>
    %108 = vector.broadcast %107 : vector<2x1xf32> to vector<2x7xf32>
    %109 = vector.broadcast %cst_29 : f32 to vector<2x7xf32>
    %110 = arith.select %106, %108, %109 : vector<2x7xi1>, vector<2x7xf32>
    %111 = arith.addf %101, %110 : vector<2x7xf32>
    %112 = arith.mulf %44, %49 : vector<2x32xf32>
    %cst_30 = arith.constant dense<0.000000e+00> : vector<2xf32>
    %113 = vector.multi_reduction <add>, %112, %cst_30 [1] : vector<2x32xf32> to vector<2xf32>
    %114 = vector.shape_cast %113 : vector<2xf32> to vector<2x1xf32>
    %c6_i32 = arith.constant 6 : i32
    %115 = vector.broadcast %c6_i32 : i32 to vector<2x7xi32>
    %116 = arith.cmpi eq, %50, %115 : vector<2x7xi32>
    %cst_31 = arith.constant 0.000000e+00 : f32
    %117 = vector.shape_cast %114 : vector<2x1xf32> to vector<2x1xf32>
    %118 = vector.broadcast %117 : vector<2x1xf32> to vector<2x7xf32>
    %119 = vector.broadcast %cst_31 : f32 to vector<2x7xf32>
    %120 = arith.select %116, %118, %119 : vector<2x7xi1>, vector<2x7xf32>
    %121 = arith.addf %111, %120 : vector<2x7xf32>
    %cst_32 = arith.constant dense<0xFF800000> : vector<2xf32>
    %122 = vector.multi_reduction <maximumf>, %121, %cst_32 [1] : vector<2x7xf32> to vector<2xf32>
    %123 = vector.shape_cast %122 : vector<2xf32> to vector<2x1xf32>
    %124 = vector.broadcast %123 : vector<2x1xf32> to vector<2x7xf32>
    %125 = arith.subf %121, %124 : vector<2x7xf32>
    %126 = math.exp %125 : vector<2x7xf32>
    %cst_33 = arith.constant dense<0.000000e+00> : vector<2xf32>
    %127 = vector.multi_reduction <add>, %126, %cst_33 [1] : vector<2x7xf32> to vector<2xf32>
    %128 = vector.shape_cast %127 : vector<2xf32> to vector<2x1xf32>
    %cst_34 = arith.constant 1.000000e+00 : f32
    %129 = vector.broadcast %cst_34 : f32 to vector<2x1xf32>
    %130 = arith.divf %129, %128 : vector<2x1xf32>
    %131 = vector.extract_strided_slice %126 {offsets = [0, 0], sizes = [2, 1], strides = [1, 1]} : vector<2x7xf32> to vector<2x1xf32>
    %132 = vector.broadcast %131 : vector<2x1xf32> to vector<2x32xf32>
    %133 = arith.mulf %132, %14 : vector<2x32xf32>
    %134 = vector.extract_strided_slice %126 {offsets = [0, 1], sizes = [2, 1], strides = [1, 1]} : vector<2x7xf32> to vector<2x1xf32>
    %135 = vector.broadcast %134 : vector<2x1xf32> to vector<2x32xf32>
    %136 = arith.mulf %135, %19 : vector<2x32xf32>
    %137 = arith.addf %133, %136 : vector<2x32xf32>
    %138 = vector.extract_strided_slice %126 {offsets = [0, 2], sizes = [2, 1], strides = [1, 1]} : vector<2x7xf32> to vector<2x1xf32>
    %139 = vector.broadcast %138 : vector<2x1xf32> to vector<2x32xf32>
    %140 = arith.mulf %139, %24 : vector<2x32xf32>
    %141 = arith.addf %137, %140 : vector<2x32xf32>
    %142 = vector.extract_strided_slice %126 {offsets = [0, 3], sizes = [2, 1], strides = [1, 1]} : vector<2x7xf32> to vector<2x1xf32>
    %143 = vector.broadcast %142 : vector<2x1xf32> to vector<2x32xf32>
    %144 = arith.mulf %143, %29 : vector<2x32xf32>
    %145 = arith.addf %141, %144 : vector<2x32xf32>
    %146 = vector.extract_strided_slice %126 {offsets = [0, 4], sizes = [2, 1], strides = [1, 1]} : vector<2x7xf32> to vector<2x1xf32>
    %147 = vector.broadcast %146 : vector<2x1xf32> to vector<2x32xf32>
    %148 = arith.mulf %147, %34 : vector<2x32xf32>
    %149 = arith.addf %145, %148 : vector<2x32xf32>
    %150 = vector.extract_strided_slice %126 {offsets = [0, 5], sizes = [2, 1], strides = [1, 1]} : vector<2x7xf32> to vector<2x1xf32>
    %151 = vector.broadcast %150 : vector<2x1xf32> to vector<2x32xf32>
    %152 = arith.mulf %151, %39 : vector<2x32xf32>
    %153 = arith.addf %149, %152 : vector<2x32xf32>
    %154 = vector.extract_strided_slice %126 {offsets = [0, 6], sizes = [2, 1], strides = [1, 1]} : vector<2x7xf32> to vector<2x1xf32>
    %155 = vector.broadcast %154 : vector<2x1xf32> to vector<2x32xf32>
    %156 = arith.mulf %155, %44 : vector<2x32xf32>
    %157 = arith.addf %153, %156 : vector<2x32xf32>
    %158 = vector.broadcast %130 : vector<2x1xf32> to vector<2x32xf32>
    %159 = arith.mulf %157, %158 : vector<2x32xf32>
    %c0_35 = arith.constant 0 : index
    %c0_36 = arith.constant 0 : index
    %160 = vector.load %arg5[%c0_35, %c0_36] : memref<64x128xf32, #tpu.memory_space<vmem>>, vector<32x128xf32>
    %c32 = arith.constant 32 : index
    %c0_37 = arith.constant 0 : index
    %161 = vector.load %arg5[%c32, %c0_37] : memref<64x128xf32, #tpu.memory_space<vmem>>, vector<32x128xf32>
    %cst_38 = arith.constant dense<0.000000e+00> : vector<2x128xf32>
    %162 = tpu.matmul %159, %160, %cst_38 {dimension_numbers = #tpu.dot_dimension_numbers<[1], [0], [0], [1], [0, 0, 1, 1], [], []>} : vector<2x32xf32>, vector<32x128xf32>, vector<2x128xf32> -> vector<2x128xf32>
    %cst_39 = arith.constant dense<0.000000e+00> : vector<2x128xf32>
    %163 = tpu.matmul %49, %161, %cst_39 {dimension_numbers = #tpu.dot_dimension_numbers<[1], [0], [0], [1], [0, 0, 1, 1], [], []>} : vector<2x32xf32>, vector<32x128xf32>, vector<2x128xf32> -> vector<2x128xf32>
    %164 = arith.addf %162, %163 : vector<2x128xf32>
    %c0_40 = arith.constant 0 : index
    %c0_41 = arith.constant 0 : index
    %165 = vector.load %arg6[%c0_40, %c0_41] : memref<1x128xf32, #tpu.memory_space<vmem>>, vector<1x128xf32>
    %166 = vector.broadcast %165 : vector<1x128xf32> to vector<2x128xf32>
    %167 = arith.addf %164, %166 : vector<2x128xf32>
    %c0_42 = arith.constant 0 : index
    %c0_43 = arith.constant 0 : index
    %168 = vector.load %arg7[%c0_42, %c0_43] : memref<2x128xf32, #tpu.memory_space<vmem>>, vector<2x128xf32>
    tpu.vector_store %arg7[%c0_42, %c0_43], %167 {strides = array<i32>} : memref<2x128xf32, #tpu.memory_space<vmem>>, vector<2x128xf32>,
    return
  }
  func.func @transform_0(%arg0: i32) -> (i32, i32, i32) {
    %c0_i32 = arith.constant 0 : i32
    %c0_i32_0 = arith.constant 0 : i32
    %c0_i32_1 = arith.constant 0 : i32
    return %c0_i32, %arg0, %c0_i32_0 : i32, i32, i32
  }
  func.func @transform_1(%arg0: i32) -> (i32, i32) {
    %c0_i32 = arith.constant 0 : i32
    %c0_i32_0 = arith.constant 0 : i32
    %c0_i32_1 = arith.constant 0 : i32
    return %c0_i32, %c0_i32_0 : i32, i32
  }
  func.func @transform_2(%arg0: i32) -> (i32, i32) {
    %c0_i32 = arith.constant 0 : i32
    %c0_i32_0 = arith.constant 0 : i32
    %c0_i32_1 = arith.constant 0 : i32
    return %c0_i32, %c0_i32_0 : i32, i32
  }
  func.func @transform_3(%arg0: i32) -> (i32, i32) {
    %c0_i32 = arith.constant 0 : i32
    %c0_i32_0 = arith.constant 0 : i32
    %c0_i32_1 = arith.constant 0 : i32
    return %c0_i32, %c0_i32_0 : i32, i32
  }
  func.func @transform_4(%arg0: i32) -> (i32, i32) {
    %c0_i32 = arith.constant 0 : i32
    %c0_i32_0 = arith.constant 0 : i32
    %c0_i32_1 = arith.constant 0 : i32
    return %c0_i32, %c0_i32_0 : i32, i32
  }
  func.func @transform_5(%arg0: i32) -> (i32, i32) {
    %c0_i32 = arith.constant 0 : i32
    %c0_i32_0 = arith.constant 0 : i32
    %c0_i32_1 = arith.constant 0 : i32
    return %c0_i32, %c0_i32_0 : i32, i32
  }
  func.func @transform_6(%arg0: i32) -> (i32, i32) {
    %c0_i32 = arith.constant 0 : i32
    %c0_i32_0 = arith.constant 0 : i32
    return %arg0, %c0_i32 : i32, i32
  }
}

</mosaic_0001>

<bundles_post_ra>
// kernel: tpu_custom_call.1
= control target key start
LH: loop header
LB: loop body
LE: loop exit
PB: predicated region body
PF: predicated region fallthrough
CT: control target
= control target key end

     0   :  { %11 = vsyncpa [#allocation3], 0  ;;  %s1852_s0 = inlined_call_operand.hbm [shape: f32[8,2,32], index: 0, kind: input, shape index: {}]   ;;  %s1853_s1 = inlined_call_operand.hbm [shape: f32[32,32], index: 1, kind: input, shape index: {}]   ;;  %s1854_s2 = inlined_call_operand.hbm [shape: f32[32,32], index: 2, kind: input, shape index: {}]   ;;  %s1855_s3 = inlined_call_operand.vmem [shape: f32[1,32], index: 3, kind: input, shape index: {}]   ;;  %s1856_s4 = inlined_call_operand.hbm [shape: f32[64,128], index: 4, kind: input, shape index: {}]   ;;  %s1857_s5 = inlined_call_operand.vmem [shape: f32[1,128], index: 5, kind: input, shape index: {}]   ;;  %s1858_s6 = inlined_call_operand.hbm [shape: f32[2,128], index: 6, kind: output, shape index: {}]  }
   0x1   :  { %12 = vsyncpa [#allocation6], 0 }
   0x2   :  { %13 = vsyncpa [#allocation9], 0 }
   0x3   :  { %14 = vsyncpa [#allocation4], 0  ;;  %s1579_s21 = smov [#allocation5]   ;;  %s1461_s25 = scalar_lea.hbm %s1853_s1, 512 }
   0x4   :  { %s32_s22 = sshll.u32 %s1579_s21, 4  ;;  %p1462_p0 = scmp.ne.s32.totalorder %s1853_s1, %s1461_s25  ;;  %s33_s22 = int_to_ptr.vmem [resolvable:$true] %s32_s22 }
   0x5   :  { %p1465_p1 = scmp.lt.u32.totalorder %s1461_s25, %s1853_s1 }
   0x7   :  { %p1467_p2 = pnand %p1465_p1, %p1462_p0 }
   0x9   :  { %1470 = shalt.err (!%p1467_p2)
}
   0xa   :  { %s1471_s30 = scalar_lea.vmem %s33_s22, 512  ;;  %p1476_p4 = scmp.lt.s32.totalorder %s33_s22, %s33_s22 }
   0xb   :  { %p1472_p3 = scmp.ne.s32.totalorder %s33_s22, %s1471_s30  ;;  %p1477_p5 = scmp.lt.s32.totalorder %s1471_s30, %s1471_s30 }
   0xd   :  { %p1478_p6 = por %p1477_p5, %p1476_p4 }
   0xf   :  { %p1479_p7 = pnand %p1478_p6, %p1472_p3 }
  0x11   :  { %1482 = shalt.err (!%p1479_p7)
}
  0x12   :  { %s1580_s7 = smov 128   ;;  %s1581_s8 = smov 8  }
  0x13   :  { %38 = dma.hbm_to_vmem [thread:$0]  %s1853_s1, 512, %s33_s22, [#allocation6], %s1580_s7, %s1580_s7, %s1581_s8  }
  0x14   :  { %s1582_s11 = smov [#allocation2]   ;;  %s1483_s15 = scalar_lea.hbm %s1852_s0, 256 }
  0x15   :  { %s20_s12 = sshll.u32 %s1582_s11, 4  ;;  %p1484_p8 = scmp.ne.s32.totalorder %s1852_s0, %s1483_s15  ;;  %s21_s12 = int_to_ptr.vmem [resolvable:$true] %s20_s12 }
  0x16   :  { %p1487_p9 = scmp.lt.u32.totalorder %s1483_s15, %s1852_s0 }
  0x18   :  { %p1489_p10 = pnand %p1487_p9, %p1484_p8 }
  0x1a   :  { %1492 = shalt.err (!%p1489_p10)
}
  0x1b   :  { %s1493_s20 = scalar_lea.vmem %s21_s12, 256  ;;  %p1498_p12 = scmp.lt.s32.totalorder %s21_s12, %s21_s12 }
  0x1c   :  { %p1494_p11 = scmp.ne.s32.totalorder %s21_s12, %s1493_s20  ;;  %p1499_p13 = scmp.lt.s32.totalorder %s1493_s20, %s1493_s20 }
  0x1e   :  { %p1500_p0 = por %p1499_p13, %p1498_p12 }
  0x20   :  { %p1501_p1 = pnand %p1500_p0, %p1494_p11 }
  0x22   :  { %1504 = shalt.err (!%p1501_p1)
}
  0x23   :  { %s1583_s1 = smov 32   ;;  %s1584_s21 = smov 2  }
  0x24   :  { %26 = dma.hbm_to_vmem [thread:$0]  %s1852_s0, 256, %s21_s12, [#allocation3], %s1583_s1, %s1583_s1, %s1584_s21  }
  0x25   :  { %s1585_s24 = smov [#allocation7]   ;;  %s1586_s26 = smov [#allocation8]  }
  0x26   :  { %s44_s25 = sshll.u32 %s1585_s24, 4  ;;  %s58_s27 = sshll.u32 %s1586_s26, 4  ;;  %s45_s25 = int_to_ptr.vmem [resolvable:$true] %s44_s25  ;;  %s1661_s27 = int_to_ptr.vmem [resolvable:$true] %s58_s27 }
  0x27   :  { %s1505_s30 = scalar_lea.hbm %s1854_s2, 512 }
  0x28   :  { %p1506_p2 = scmp.ne.s32.totalorder %s1854_s2, %s1505_s30  ;;  %p1509_p3 = scmp.lt.u32.totalorder %s1505_s30, %s1854_s2 }
  0x2a   :  { %p1511_p4 = pnand %p1509_p3, %p1506_p2 }
  0x2c   :  { %1514 = shalt.err (!%p1511_p4)
}
  0x2d   :  { %s1515_s0 = scalar_lea.vmem %s45_s25, 512  ;;  %p1520_p6 = scmp.lt.s32.totalorder %s45_s25, %s45_s25 }
  0x2e   :  { %p1516_p5 = scmp.ne.s32.totalorder %s45_s25, %s1515_s0  ;;  %p1521_p7 = scmp.lt.s32.totalorder %s1515_s0, %s1515_s0 }
  0x30   :  { %p1522_p8 = por %p1521_p7, %p1520_p6 }
  0x32   :  { %p1523_p9 = pnand %p1522_p8, %p1516_p5 }
  0x34   :  { %1526 = shalt.err (!%p1523_p9)
}
  0x35   :  { %50 = dma.hbm_to_vmem [thread:$0]  %s1854_s2, 512, %s45_s25, [#allocation6], %s1580_s7, %s1580_s7, %s1581_s8  }
  0x36   :  { %s1527_s17 = scalar_lea.hbm %s1856_s4, 1024 }
  0x37   :  { %p1528_p10 = scmp.ne.s32.totalorder %s1856_s4, %s1527_s17  ;;  %p1531_p11 = scmp.lt.u32.totalorder %s1527_s17, %s1856_s4 }
  0x39   :  { %p1533_p12 = pnand %p1531_p11, %p1528_p10 }
  0x3b   :  { %1536 = shalt.err (!%p1533_p12)
}
  0x3c   :  { %s1537_s21 = scalar_lea.vmem %s1661_s27, 1024  ;;  %p1542_p0 = scmp.lt.s32.totalorder %s1661_s27, %s1661_s27 }
  0x3d   :  { %p1538_p13 = scmp.ne.s32.totalorder %s1661_s27, %s1537_s21  ;;  %p1543_p1 = scmp.lt.s32.totalorder %s1537_s21, %s1537_s21 }
  0x3f   :  { %p1544_p2 = por %p1543_p1, %p1542_p0 }
  0x41   :  { %p1545_p3 = pnand %p1544_p2, %p1538_p13 }
  0x43   :  { %1548 = shalt.err (!%p1545_p3)
}
  0x44   :  { %64 = dma.hbm_to_vmem [thread:$0]  %s1856_s4, 1024, %s1661_s27, [#allocation9], %s1580_s7, %s1580_s7, %s1581_s8  }
  0x45   :  { %1571 = dma.done.wait [#allocation3], 256  }
  0x46   :  { %1572 = vsyncadd [#allocation3], 4294967040 }
  0x47   :  { %1573 = dma.done.wait [#allocation6], 1024  }
  0x48   :  { %1574 = vsyncadd [#allocation6], 4294966272 }
  0x49   :  { %1575 = dma.done.wait [#allocation9], 1024  }
  0x4a   :  { %1576 = vsyncadd [#allocation9], 4294966272  ;;  %v115_v0 = vlaneseq  ;;  %v1587_v1 = vmov 0.0|0.0   ;;  %v1588_v2 = vmov 1983009808   ;;  %vm1589_vm0 = vmmov 0  }
  0x4b   :  { %1353 = vmatprep.subr.bf16.mxu1 %v1587_v1  ;;  %v113_v3 = vunpack.c.l.s4 %v1588_v2  ;;  %v1590_v4 = vmov 0.0   ;;  %v79_v7 = vld [vmem:[#allocation5] sm:$0xff]  ;;  %v80_v8 = vld [vmem:[#allocation5 + $0x8] sm:$0xff]  ;;  %v81_v9 = vld [vmem:[#allocation5 + $0x10] sm:$0xff]  ;;  %vm144_vm1 = vcmask 261120   ;;  %vm871_vm2 = vcmask 254976  }
  0x4c   :  { %1243 = vmatprep.mubr.msk.f32.mxu1 %vm1589_vm0, %v1590_v4  ;;  %v116_v6 = vshrl.u32 %v115_v0, 7  ;;  %v1345_v10 = vpack.c.bf16 %v80_v8, %v79_v7  ;;  %v82_v11 = vld [vmem:[#allocation5 + $0x18] sm:$0xff]  ;;  %v83_v12 = vld [vmem:[#allocation7] sm:$0xff]  ;;  %v84_v13 = vld [vmem:[#allocation7 + $0x8] sm:$0xff]  ;;  %vm920_vm10 = vcmask 50176   ;;  %s1598_s23 = smov [#allocation10]  }
  0x4d   :  { %v114_v5 = vunpack.c.0.s8 %v113_v3  ;;  %v1349_v15 = vpack.c.bf16 %v82_v11, %v81_v9  ;;  %v1704_v16 = vpack.c.bf16 %v84_v13, %v83_v12  ;;  %v88_v17 = vld [vmem:[#allocation2] sm:$0x3]  ;;  %v89_v18 = vld [vmem:[#allocation2 + $0x2] sm:$0x3]  ;;  %v90_v19 = vld [vmem:[#allocation2 + $0x4] sm:$0x3] }
  0x4e   :  { %1346 = vmatprep.subr.bf16.mxu0 %v1345_v10  ;;  %v91_v20 = vld [vmem:[#allocation2 + $0x6] sm:$0x3]  ;;  %v110_v21 = vcombine.low %v88_v17, %v89_v18  ;;  %v92_v22 = vld [vmem:[#allocation2 + $0x8] sm:$0x3]  ;;  %v93_v23 = vld [vmem:[#allocation2 + $0xa] sm:$0x3] }
  0x4f   :  { %v1702_v14 = vsub.s32 %v114_v5, %v116_v6  ;;  %1348 = vmatpush3.bf16.msra.mxu0 %v1345_v10  ;;  %1355 = vmatpush3.bf16.msra.mxu1 %v1704_v16  ;;  %v111_v24 = vcombine.low %v90_v19, %v91_v20  ;;  %v94_v25 = vld [vmem:[#allocation2 + $0xc] sm:$0x3]  ;;  %v95_v26 = vld [vmem:[#allocation2 + $0xe] sm:$0x3]  ;;  %v127_v27 = vcombine.low %v92_v22, %v93_v23  ;;  %v85_v28 = vld [vmem:[#allocation7 + $0x10] sm:$0xff]  ;;  %s1144_s24 = sshll.u32 %s1598_s23, 4  ;;  %s1145_s24 = int_to_ptr.vmem [resolvable:$true] %s1144_s24 }
  0x50   :  { %1350 = vmatprep.subr.bf16.mxu0 %v1349_v15  ;;  %v128_v30 = vcombine.low %v94_v25, %v95_v26  ;;  %1356 = vmatprep.subr.bf16.mxu1 %v1587_v1  ;;  %v86_v31 = vld [vmem:[#allocation7 + $0x18] sm:$0xff]  ;;  %v1155_v38 = vld [vmem:[%s1855_s3] ss:$0 sm:$0xff]  ;;  %v979_v20 = vld [vmem:[#allocation8 + $0x20] sm:$0xff]  ;;  %s1549_s25 = scalar_lea.vmem %s1145_s24, 32  ;;  %p1554_p5 = scmp.lt.s32.totalorder %s1145_s24, %s1145_s24 }
  0x51   :  { %v118_v29 = vrot.slane %v110_v21, %v1702_v14  ;;  %v125_v32 = vrot.slane %v111_v24, %v1702_v14  ;;  %v135_v33 = vrot.slane %v127_v27, %v1702_v14  ;;  %v1711_v34 = vpack.c.bf16 %v86_v31, %v85_v28  ;;  %v980_v21 = vld [vmem:[#allocation8 + $0x28] sm:$0xff]  ;;  %v981_v22 = vld [vmem:[#allocation8 + $0x30] sm:$0xff]  ;;  %v982_v24 = vld [vmem:[#allocation8 + $0x38] sm:$0xff]  ;;  %p1550_p4 = scmp.ne.s32.totalorder %s1145_s24, %s1549_s25  ;;  %p1555_p6 = scmp.lt.s32.totalorder %s1549_s25, %s1549_s25 }
  0x52   :  { %v142_v35 = vrot.slane %v128_v30, %v1702_v14  ;;  %v1402_v23 = vpack.c.bf16 %v980_v21, %v979_v20  ;;  %v1405_v25 = vpack.c.bf16 %v982_v24, %v981_v22  ;;  %v1593_v20 = vmov 2  }
  0x53   :  { %1352 = vmatpush3.bf16.msra.mxu0 %v1349_v15  ;;  %v126_v36 = vcombine.low %v118_v29, %v125_v32  ;;  %1358 = vmatpush3.bf16.msra.mxu1 %v1711_v34  ;;  %v1594_v21 = vmov 3   ;;  %v1595_v22 = vmov 4   ;;  %v1597_v24 = vmov 6   ;;  %p1556_p7 = por %p1555_p6, %p1554_p5 }
  0x54   :  { %v143_v37 = vcombine.low %v135_v33, %v142_v35  ;;  %1359 = vmatprep.subr.bf16.mxu0 %v1587_v1  ;;  %1365 = vmatprep.subr.bf16.mxu1 %v1587_v1 }
  0x55   :  { %1232 = vmatprep.mubr.msk.f32.mxu0 %vm144_vm1, %v126_v36  ;;  %p1557_p8 = pnand %p1556_p7, %p1550_p4 }
  0x56   :  { %1233 = vmatmul.mubr.msk.f32.vlgmr.msra.gmra.mrb[0].mxu0 %vm144_vm1, %v143_v37  ;;  %1244 = vmatmul.mubr.f32.vlgmr.msra.gmra.mrb[0].mxu1 %v1590_v4 }
  0x57   :  { %1361 = vmatpush3.bf16.msra.mxu0 %v1704_v16  ;;  %1254 = vmatprep.mubr.msk.f32.mxu0 %vm1589_vm0, %v1590_v4 }
  0x58   :  { %1362 = vmatprep.subr.bf16.mxu0 %v1587_v1  ;;  %1367 = vmatpush3.bf16.msra.mxu1 %v1704_v16 }
  0x59   :  { %1368 = vmatprep.subr.bf16.mxu1 %v1587_v1  ;;  %1265 = vmatprep.mubr.msk.f32.mxu1 %vm1589_vm0, %v1590_v4 }
  0x5b   :  { %1364 = vmatpush3.bf16.msra.mxu0 %v1711_v34 }
  0x5c   :  { %1370 = vmatpush3.bf16.msra.mxu1 %v1711_v34  ;;  %1371 = vmatprep.subr.bf16.mxu0 %v1587_v1 }
  0x5d   :  { %1377 = vmatprep.subr.bf16.mxu1 %v1587_v1 }
 0x129   :  { %v1234_v39 = vpop.f32.mrb[0].mxu0  ;;  %v337_v40 = vpop.f32.mrb[0].mxu1 }
 0x12a   :  { %v1735_v41 = vadd.f32 %v1234_v39, %v1155_v38  ;;  %v215_v42 = vpop.f32.mrb[1].mxu0  ;;  %v1245_v43 = vpop.f32.mrb[1].mxu1 }
 0x12b   :  { %v216_v44 = vadd.f32 %v1155_v38, %v215_v42  ;;  %v869_v43 = vand.u32 127, %v115_v0 }
 0x12c   :  { %v250_v2 = vrot.slane %v1735_v41, %v1702_v14  ;;  %v243_v13 = vcombine.high %v1735_v41, %v1735_v41 }
 0x12d   :  { %v233_v45 = vrot.slane %v216_v44, %v1702_v14  ;;  %v226_v53 = vcombine.high %v216_v44, %v216_v44  ;;  %vm875_vm3 = vcmp.eq.s32.totalorder %v869_v43, 0  ;;  %vm882_vm4 = vcmp.eq.s32.totalorder %v869_v43, 1 }
 0x12e   :  { %v258_v8 = vcombine.high %v250_v2, %v250_v2  ;;  %v257_v15 = vrot.slane %v243_v13, %v1702_v14  ;;  %vm889_vm5 = vcmp.eq.s32.totalorder %v869_v43, 2  ;;  %vm896_vm6 = vcmp.eq.s32.totalorder %v869_v43, 3 }
 0x12f   :  { %v341_v46 = vadd.f32 %v337_v40, %v233_v45  ;;  %v241_v48 = vcombine.high %v233_v45, %v233_v45  ;;  %v240_v54 = vrot.slane %v226_v53, %v1702_v14  ;;  %vm903_vm7 = vcmp.eq.s32.totalorder %v869_v43, 4 }
 0x130   :  { %v259_v14 = vcombine.high %v257_v15, %v257_v15  ;;  %vm910_vm8 = vcmp.eq.s32.totalorder %v869_v43, 5  ;;  %vm917_vm9 = vcmp.eq.s32.totalorder %v869_v43, 6 }
 0x131   :  { %1441 = vtanh.f32 %v341_v46  ;;  %v242_v59 = vcombine.high %v240_v54, %v240_v54 }
 0x13b   :  { %v1738_v47 = vpop.eup %1441 }
 0x13c   :  { %1255 = vmatmul.mubr.msk.f32.vlgmr.msra.gmra.mrb[2].mxu0 %vm144_vm1, %v1738_v47 }
 0x13d   :  { %1373 = vmatpush3.bf16.msra.mxu0 %v1704_v16  ;;  %1276 = vmatprep.mubr.msk.f32.mxu0 %vm1589_vm0, %v1590_v4 }
 0x13e   :  { %1374 = vmatprep.subr.bf16.mxu0 %v1587_v1 }
 0x141   :  { %1376 = vmatpush3.bf16.msra.mxu0 %v1711_v34 }
 0x142   :  { %1383 = vmatprep.subr.bf16.mxu0 %v1587_v1 }
 0x20f   :  { %v412_v49 = vpop.f32.mrb[2].mxu0 }
 0x210   :  { %v416_v50 = vadd.f32 %v412_v49, %v241_v48  ;;  %v1256_v51 = vpop.f32.mrb[3].mxu0 }
 0x212   :  { %1443 = vtanh.f32 %v416_v50 }
 0x21c   :  { %v1748_v52 = vpop.eup %1443 }
 0x21d   :  { %1266 = vmatmul.mubr.msk.f32.vlgmr.msra.gmra.mrb[2].mxu1 %vm144_vm1, %v1748_v52 }
 0x21e   :  { %1379 = vmatpush3.bf16.msra.mxu1 %v1704_v16  ;;  %1287 = vmatprep.mubr.msk.f32.mxu1 %vm1589_vm0, %v1590_v4 }
 0x21f   :  { %1380 = vmatprep.subr.bf16.mxu1 %v1587_v1 }
 0x222   :  { %1382 = vmatpush3.bf16.msra.mxu1 %v1711_v34 }
 0x223   :  { %1389 = vmatprep.subr.bf16.mxu1 %v1587_v1 }
 0x2f0   :  { %v487_v55 = vpop.f32.mrb[2].mxu1 }
 0x2f1   :  { %v491_v56 = vadd.f32 %v487_v55, %v240_v54  ;;  %v1267_v57 = vpop.f32.mrb[3].mxu1 }
 0x2f3   :  { %1445 = vtanh.f32 %v491_v56 }
 0x2fd   :  { %v1759_v58 = vpop.eup %1445 }
 0x2fe   :  { %1277 = vmatmul.mubr.msk.f32.vlgmr.msra.gmra.mrb[4].mxu0 %vm144_vm1, %v1759_v58 }
 0x2ff   :  { %1385 = vmatpush3.bf16.msra.mxu0 %v1704_v16  ;;  %1298 = vmatprep.mubr.msk.f32.mxu0 %vm1589_vm0, %v1590_v4 }
 0x300   :  { %1386 = vmatprep.subr.bf16.mxu0 %v1587_v1 }
 0x303   :  { %1388 = vmatpush3.bf16.msra.mxu0 %v1711_v34 }
 0x304   :  { %1395 = vmatprep.subr.bf16.mxu0 %v1587_v1 }
 0x3d1   :  { %v562_v60 = vpop.f32.mrb[4].mxu0 }
 0x3d2   :  { %v566_v61 = vadd.f32 %v562_v60, %v242_v59  ;;  %v1278_v62 = vpop.f32.mrb[5].mxu0 }
 0x3d4   :  { %1447 = vtanh.f32 %v566_v61 }
 0x3de   :  { %v1769_v63 = vpop.eup %1447 }
 0x3df   :  { %1288 = vmatmul.mubr.msk.f32.vlgmr.msra.gmra.mrb[4].mxu1 %vm144_vm1, %v1769_v63 }
 0x3e0   :  { %1391 = vmatpush3.bf16.msra.mxu1 %v1704_v16  ;;  %1309 = vmatprep.mubr.msk.f32.mxu1 %vm1589_vm0, %v1590_v4 }
 0x3e1   :  { %1392 = vmatprep.subr.bf16.mxu1 %v1587_v1 }
 0x3e4   :  { %1394 = vmatpush3.bf16.msra.mxu1 %v1711_v34 }
 0x3e5   :  { %1401 = vmatprep.subr.bf16.mxu1 %v1587_v1 }
 0x4b2   :  { %v637_v3 = vpop.f32.mrb[4].mxu1 }
 0x4b3   :  { %v641_v5 = vadd.f32 %v637_v3, %v250_v2  ;;  %v1289_v6 = vpop.f32.mrb[5].mxu1 }
 0x4b5   :  { %1449 = vtanh.f32 %v641_v5 }
 0x4bf   :  { %v1781_v7 = vpop.eup %1449 }
 0x4c0   :  { %1299 = vmatmul.mubr.msk.f32.vlgmr.msra.gmra.mrb[6].mxu0 %vm144_vm1, %v1781_v7 }
 0x4c1   :  { %1397 = vmatpush3.bf16.msra.mxu0 %v1704_v16  ;;  %1320 = vmatprep.mubr.msk.f32.mxu0 %vm1589_vm0, %v1590_v4 }
 0x4c2   :  { %1398 = vmatprep.subr.bf16.mxu0 %v1587_v1 }
 0x4c5   :  { %1400 = vmatpush3.bf16.msra.mxu0 %v1711_v34 }
 0x4c6   :  { %1407 = vmatprep.subr.bf16.mxu0 %v1587_v1 }
 0x593   :  { %v712_v9 = vpop.f32.mrb[6].mxu0 }
 0x594   :  { %v716_v10 = vadd.f32 %v712_v9, %v258_v8  ;;  %v1300_v11 = vpop.f32.mrb[7].mxu0  ;;  %v1591_v8 = vmov 0  }
 0x595   :  { %1433 = vset.pattern.permute.xlu1 %v1591_v8  ;;  %v1592_v11 = vmov 1  }
 0x596   :  { %1451 = vtanh.f32 %v716_v10  ;;  %1434 = vset.pattern.permute.xlu0 %v1592_v11 }
 0x5a0   :  { %v1791_v12 = vpop.eup %1451 }
 0x5a1   :  { %1310 = vmatmul.mubr.msk.f32.vlgmr.msra.gmra.mrb[6].mxu1 %vm144_vm1, %v1791_v12 }
 0x5a2   :  { %1331 = vmatprep.mubr.msk.f32.mxu1 %vm1589_vm0, %v1590_v4  ;;  %1403 = vmatpush3.bf16.msra.mxu1 %v1402_v23  ;;  %v1596_v23 = vmov 5  }
 0x5a3   :  { %1404 = vmatprep.subr.bf16.mxu1 %v1587_v1 }
 0x5a6   :  { %1406 = vmatpush3.bf16.msra.mxu1 %v1405_v25  ;;  %v975_v25 = vld [vmem:[#allocation8] sm:$0xff] }
 0x674   :  { %v787_v16 = vpop.f32.mrb[6].mxu1 }
 0x675   :  { %v791_v17 = vadd.f32 %v787_v16, %v257_v15  ;;  %v1311_v18 = vpop.f32.mrb[7].mxu1 }
 0x677   :  { %1453 = vtanh.f32 %v791_v17 }
 0x681   :  { %v1800_v19 = vpop.eup %1453 }
 0x682   :  { %1321 = vmatmul.mubr.msk.f32.vlgmr.msra.gmra.mrb[8].mxu0 %vm144_vm1, %v1800_v19 }
 0x683   :  { %1342 = vmatprep.mubr.msk.f32.mxu0 %vm1589_vm0, %v1590_v4 }
 0x755   :  { %v862_v26 = vpop.f32.mrb[8].mxu0 }
 0x756   :  { %v866_v27 = vadd.f32 %v862_v26, %v259_v14  ;;  %v1322_v28 = vpop.f32.mrb[9].mxu0  ;;  %v976_v14 = vld [vmem:[#allocation8 + $0x8] sm:$0xff] }
 0x757   :  { %v1408_v26 = vpack.c.bf16 %v976_v14, %v975_v25  ;;  %v978_v28 = vld [vmem:[#allocation8 + $0x18] sm:$0xff] }
 0x758   :  { %1455 = vtanh.f32 %v866_v27  ;;  %v977_v27 = vld [vmem:[#allocation8 + $0x10] sm:$0xff] }
 0x759   :  { %1409 = vmatpush3.bf16.msra.mxu0 %v1408_v26 }
 0x75a   :  { %1410 = vmatprep.subr.bf16.mxu0 %v1587_v1 }
 0x762   :  { %v1456_v29 = vpop.eup %1455 }
 0x763   :  { %1332 = vmatmul.mubr.msk.f32.vlgmr.msra.gmra.mrb[8].mxu1 %vm144_vm1, %v1456_v29  ;;  %v885_v4 = vmul.f32 %v1456_v29, %v1759_v58  ;;  %v870_v30 = vmul.f32 %v1456_v29, %v1738_v47  ;;  %v892_v33 = vmul.f32 %v1456_v29, %v1769_v63  ;;  %v878_v34 = vmul.f32 %v1456_v29, %v1748_v52 }
 0x764   :  { %v906_v37 = vmul.f32 %v1456_v29, %v1791_v12  ;;  %v899_v38 = vmul.f32 %v1456_v29, %v1781_v7  ;;  %v913_v41 = vmul.f32 %v1456_v29, %v1800_v19  ;;  %v1411_v29 = vpack.c.bf16 %v978_v28, %v977_v27 }
 0x765   :  { %v886_v31 = vsel %vm871_vm2, %v885_v4, 0.0  ;;  %v872_v32 = vsel %vm871_vm2, %v870_v30, 0.0  ;;  %v893_v35 = vsel %vm871_vm2, %v892_v33, 0.0  ;;  %v879_v36 = vsel %vm871_vm2, %v878_v34, 0.0 }
 0x766   :  { %887 = vadd.xlane.f32.xlu1 %v886_v31  ;;  %873 = vadd.xlane.f32.xlu0 %v872_v32  ;;  %v907_v39 = vsel %vm871_vm2, %v906_v37, 0.0  ;;  %v900_v40 = vsel %vm871_vm2, %v899_v38, 0.0  ;;  %v914_v42 = vsel %vm871_vm2, %v913_v41, 0.0 }
 0x767   :  { %1412 = vmatpush3.bf16.msra.mxu0 %v1411_v29 }
 0x76a   :  { %894 = vadd.xlane.f32.xlu1 %v893_v35  ;;  %880 = vadd.xlane.f32.xlu0 %v879_v36 }
 0x76e   :  { %908 = vadd.xlane.f32.xlu1 %v907_v39  ;;  %901 = vadd.xlane.f32.xlu0 %v900_v40 }
 0x772   :  { %915 = vadd.xlane.f32.xlu0 %v914_v42 }
 0x7f3   :  { %v888_v44 = vpop.xlane.xlu1 %887  ;;  %v874_v45 = vpop.xlane.xlu0 %873 }
 0x7f4   :  { %v876_v49 = vsel %vm875_vm3, %v874_v45, 0.0  ;;  %v890_v53 = vsel %vm889_vm5, %v888_v44, 0.0 }
 0x7f7   :  { %v895_v46 = vpop.xlane.xlu1 %894  ;;  %v881_v48 = vpop.xlane.xlu0 %880 }
 0x7f8   :  { %v883_v50 = vsel %vm882_vm4, %v881_v48, 0.0  ;;  %v897_v56 = vsel %vm896_vm6, %v895_v46, 0.0 }
 0x7f9   :  { %v884_v51 = vadd.f32 %v883_v50, %v876_v49 }
 0x7fb   :  { %v891_v54 = vadd.f32 %v890_v53, %v884_v51  ;;  %v902_v55 = vpop.xlane.xlu0 %901  ;;  %v909_v57 = vpop.xlane.xlu1 %908 }
 0x7fc   :  { %v904_v0 = vsel %vm903_vm7, %v902_v55, 0.0  ;;  %v911_v62 = vsel %vm910_vm8, %v909_v57, 0.0 }
 0x7fd   :  { %v898_v59 = vadd.f32 %v897_v56, %v891_v54 }
 0x7ff   :  { %v905_v60 = vadd.f32 %v904_v0, %v898_v59  ;;  %v916_v61 = vpop.xlane.xlu0 %915 }
 0x800   :  { %v918_v3 = vsel %vm917_vm9, %v916_v61, 0.0 }
 0x801   :  { %v912_v2 = vadd.f32 %v911_v62, %v905_v60 }
 0x803   :  { %v919_v5 = vadd.f32 %v918_v3, %v912_v2 }
 0x805   :  { %v921_v6 = vsel %vm920_vm10, %v919_v5, -inf }
 0x806   :  { %922 = vmax.xlane.f32.xlu1 %v921_v6 }
 0x836   :  { %v1824_v9 = vpop.f32.mrb[8].mxu1 }
 0x837   :  { %v1333_v10 = vpop.f32.mrb[9].mxu1 }
 0x893   :  { %v923_v13 = vpop.xlane.xlu1 %922 }
 0x894   :  { %v924_v15 = vsub.f32 %v919_v5, %v923_v13 }
 0x896   :  { %v925_v16 = vmul.f32 1.442695, %v924_v15 }
 0x898   :  { %1457 = vpow2.f32 %v925_v16 }
 0x8a2   :  { %v1458_v17 = vpop.eup %1457 }
 0x8a3   :  { %934 = vperm.xlu1 %1433, %v1458_v17   ;;  %v927_v18 = vsel %vm920_vm10, %v1458_v17, 0.0 }
 0x8a4   :  { %928 = vadd.xlane.f32.xlu0 %v927_v18 }
 0x8a7   :  { %1435 = vset.pattern.permute.xlu1 %v1593_v20 }
 0x8a8   :  { %945 = vperm.xlu1 %1435, %v1458_v17  }
 0x8ac   :  { %1436 = vset.pattern.permute.xlu1 %v1594_v21 }
 0x8ad   :  { %951 = vperm.xlu1 %1436, %v1458_v17  }
 0x8b1   :  { %1437 = vset.pattern.permute.xlu1 %v1595_v22 }
 0x8b2   :  { %957 = vperm.xlu1 %1437, %v1458_v17  }
 0x8b6   :  { %1438 = vset.pattern.permute.xlu1 %v1596_v23 }
 0x8b7   :  { %963 = vperm.xlu1 %1438, %v1458_v17  }
 0x8ba   :  { %939 = vperm.xlu0 %1434, %v1458_v17  }
 0x8bb   :  { %1439 = vset.pattern.permute.xlu1 %v1597_v24 }
 0x8bc   :  { %969 = vperm.xlu1 %1439, %v1458_v17  }
 0x8be   :  { %1440 = vset.pattern.permute.xlu0 %v1597_v24 }
 0x922   :  { %v935_v4 = vpop.permute.xlu1 %934 }
 0x923   :  { %v937_v35 = vmul.f32 %v1738_v47, %v935_v4 }
 0x927   :  { %v946_v30 = vpop.permute.xlu1 %945 }
 0x928   :  { %v948_v38 = vmul.f32 %v1759_v58, %v946_v30 }
 0x92c   :  { %v952_v31 = vpop.permute.xlu1 %951 }
 0x92d   :  { %v954_v1 = vmul.f32 %v1769_v63, %v952_v31  ;;  %v1167_v63 = vld [vmem:[%s1857_s5] ss:$0 sm:$0xff] }
 0x931   :  { %v958_v32 = vpop.permute.xlu1 %957  ;;  %v929_v33 = vpop.xlane.xlu0 %928 }
 0x932   :  { %1459 = vrcp.f32 %v929_v33  ;;  %v960_v41 = vmul.f32 %v1781_v7, %v958_v32 }
 0x936   :  { %v964_v37 = vpop.permute.xlu1 %963 }
 0x937   :  { %v966_v44 = vmul.f32 %v1791_v12, %v964_v37 }
 0x939   :  { %v940_v34 = vpop.permute.xlu0 %939 }
 0x93a   :  { %v942_v36 = vmul.f32 %v1748_v52, %v940_v34 }
 0x93b   :  { %v970_v43 = vpop.permute.xlu1 %969 }
 0x93c   :  { %v943_v39 = vadd.f32 %v942_v36, %v937_v35  ;;  %v972_v47 = vmul.f32 %v1800_v19, %v970_v43  ;;  %v1460_v52 = vpop.eup %1459 }
 0x93e   :  { %v949_v40 = vadd.f32 %v948_v38, %v943_v39 }
 0x940   :  { %v955_v42 = vadd.f32 %v954_v1, %v949_v40 }
 0x942   :  { %v961_v45 = vadd.f32 %v960_v41, %v955_v42 }
 0x944   :  { %v967_v46 = vadd.f32 %v966_v44, %v961_v45 }
 0x946   :  { %v973_v48 = vadd.f32 %v972_v47, %v967_v46 }
 0x948   :  { %v974_v49 = vmul.f32 %v1460_v52, %v973_v48 }
 0x94a   :  { %1343 = vmatmul.mubr.msk.f32.vlgmr.msra.gmra.mrb[10].mxu0 %vm144_vm1, %v974_v49 }
 0xa1d   :  { %v1125_v58 = vpop.f32.mrb[10].mxu0 }
 0xa1e   :  { %v1126_v7 = vadd.f32 %v1125_v58, %v1824_v9  ;;  %v1344_v50 = vpop.f32.mrb[11].mxu0 }
 0xa20   :  { %v1136_v12 = vadd.f32 %v1167_v63, %v1126_v7 }
 0xa22   :  { %1137 = vst [vmem:[#allocation10] sm:$0x3] %v1136_v12 }
 0xa23   :  { %1560 = shalt.err (!%p1557_p8)
}
 0xa24   :  { %s1561_s28 = scalar_lea.hbm %s1858_s6, 32 }
 0xa25   :  { %p1562_p9 = scmp.ne.s32.totalorder %s1858_s6, %s1561_s28  ;;  %p1565_p10 = scmp.lt.u32.totalorder %s1561_s28, %s1858_s6 }
 0xa27   :  { %p1567_p11 = pnand %p1565_p10, %p1562_p9 }
 0xa29   :  { %1570 = shalt.err (!%p1567_p11)
}
 0xa2a   :  { %1147 = dma.vmem_to_hbm [thread:$0]  %s1145_s24, 32, %s1858_s6, [#allocation4]  }
 0xa2b   :  { %1577 = dma.done.wait [#allocation4], 32  }
 0xa2c   :  { %1578 = vsyncadd [#allocation4], 4294967264 }
 0xa2d   :  { %1151 = vsyncpa [#allocation3], 1 }
 0xa2e   :  { %1152 = vsyncpa [#allocation6], 1 }
 0xa2f   :  { %1153 = vsyncpa [#allocation9], 1 }
 0xa30   :  { %1154 = vsyncpa [#allocation4], 1 }

</bundles_post_ra>
